<compile_context>
chip_gen: v7x
topology: tpu7x:2x2x1
jax: 0.10.0
libtpu: 0.0.40
codegen_flags: <defaults>
</compile_context>

<pallas_src>
import functools
import math

import jax
import jax.numpy as jnp
import numpy as np
from jax.experimental import pallas as pl
from jax.experimental.pallas import tpu as pltpu


def _transition_kernel(x_ref, scale_ref, shift_ref, w_ref, o_ref):
    # x_ref:     (2*TH, Wp, 2*C)  storage-dtype NHWC rows;
    #            lane dim = [even-W-column channels | odd-W-column channels]
    # scale_ref: (1, 1, 2*C) f32  BN scale (tiled twice) = gamma / sqrt(var+eps)
    # shift_ref: (1, 1, 2*C) f32  BN shift (tiled twice) = beta - mean*scale
    # w_ref:     (C, Cout)        1x1 conv weight^T, pre-scaled by 0.25
    # o_ref:     (TH*Wp, Cout)    pooled conv output rows (f32)
    x = x_ref[...].astype(jnp.float32)
    # BN affine + ReLU on the full, lane-packed tile.
    h = jnp.maximum(x * scale_ref[...] + shift_ref[...], 0.0)        # (2TH,Wp,2C)

    two_th, wp, two_c = h.shape
    th = two_th // 2
    c = two_c // 2

    # 2x2 pooling as plain sums (the 1/4 is folded into w_ref):
    #   W-pair: lane-slice add (even-column chans + odd-column chans)
    hw = h[:, :, :c] + h[:, :, c:]                                   # (2TH,Wp,C)
    #   H-pair: split the row (major) axis -> free reshape, then add.
    hh = hw.reshape(th, 2, wp, c)
    pooled = hh[:, 0] + hh[:, 1]                                     # (TH,Wp,C)

    # Merge TH into the sublane dim.  Free when Wp % 8 == 0; otherwise Mosaic
    # inserts a VMEM relayout copy (accepted; kernel stays HBM-bound).
    pooled = pooled.reshape(th * wp, c)                              # (TH*Wp,C)

    o_ref[...] = jnp.dot(pooled.astype(w_ref.dtype), w_ref[...],
                         preferred_element_type=jnp.float32).astype(o_ref.dtype)


def _pick_row_pair_tile(row_pairs, wp, bytes_per_pair, target_bytes):
    """Pick TH = output-row-pairs per grid step.

    TH must divide `row_pairs` exactly (so no HBM pad pass is needed), the out
    block sublane dim TH*Wp must be a multiple of 8 (unless single-tile), the
    input tile should be <= ~target_bytes, and an even grid-step count is
    preferred (v7x has 2 TensorCores sharing the parallel axis).
    Returns None if no acceptable divisor exists (caller falls back to padding).
    """
    q = 8 // math.gcd(wp, 8)
    max_th = max(1, target_bytes // bytes_per_pair)
    divs = set()
    i = 1
    while i * i <= row_pairs:
        if row_pairs % i == 0:
            divs.add(i)
            divs.add(row_pairs // i)
        i += 1
    valid = sorted((d for d in divs
                    if d <= max_th and (d % q == 0 or d == row_pairs)),
                   reverse=True)
    if not valid:
        return None
    best = valid[0]
    even = [d for d in valid if (row_pairs // d) % 2 == 0]
    if even and 2 * even[0] >= best:      # take the even grid if it costs <=2x tile size
        best = even[0]
    # Reject pathologically small tiles (e.g. large prime row_pairs).
    if best * bytes_per_pair * 8 < min(target_bytes, row_pairs * bytes_per_pair):
        return None
    return best


def transition_forward(x_nchw, gamma, beta, conv_w, eps=1e-5,
                       storage_dtype=jnp.bfloat16):
    """x_nchw: (N, C, H, W) f32.  conv_w: (Cout, C, 1, 1).
    Returns (N, Cout, H//2, W//2), matching PyTorch training-mode forward.
    # TODO(synk): BatchNorm eval mode (running_mean/running_var) not implemented.
    """
    N, C, H, W = x_nchw.shape
    assert H % 2 == 0 and W % 2 == 0, "avg_pool2d(2) expects even spatial dims"
    Cout = conv_w.shape[0]
    Hp, Wp = H // 2, W // 2
    M = N * Hp * Wp

    # ---- layout plumbing: one NCHW->NHWC transpose, then FREE reshape to
    # (N*H, Wp, 2C); stored in `storage_dtype` (bf16 by default) so the
    # dominant HBM read is halved.  allow_input_fusion (below) lets XLA fuse
    # this transpose/convert into the pallas_call operand read.
    x_rows = (jnp.transpose(x_nchw, (0, 2, 3, 1))
              .reshape(N * H, Wp, 2 * C)
              .astype(storage_dtype))

    # ---- training-mode BN batch stats from the SAME packed array, ONE pass.
    # Mean-shifted single-pass moments (pivot = first pixel's channel values):
    # sum(d) and sum(d*d) fuse into one read, and the shift removes the
    # catastrophic cancellation of the naive E[x^2] - E[x]^2 form.
    xf = x_rows.astype(jnp.float32)
    pivot = xf[0, 0, :C]                                  # per-channel pivot
    pivot2 = jnp.concatenate([pivot, pivot])              # (2C,)
    d = xf - pivot2
    s1 = jnp.sum(d, axis=(0, 1))                          # (2C,)
    s2 = jnp.sum(d * d, axis=(0, 1))                      # (2C,)
    cnt = float(N * H * W)
    dm = (s1[:C] + s1[C:]) / cnt
    var = (s2[:C] + s2[C:]) / cnt - dm * dm               # biased var (train mode)
    mean = pivot + dm
    scale = gamma.astype(jnp.float32) / jnp.sqrt(var + eps)
    shift = beta.astype(jnp.float32) - mean * scale
    scale2 = jnp.concatenate([scale, scale]).reshape(1, 1, 2 * C)
    shift2 = jnp.concatenate([shift, shift]).reshape(1, 1, 2 * C)

    # fold the 2x2 average (0.25) into the 1x1-conv weight
    w = (conv_w.reshape(Cout, C).T.astype(jnp.float32) * 0.25).astype(storage_dtype)

    # ---- tiling: exact divisors (no pad pass), big tiles, even-grid pref ----
    itemsize = jnp.dtype(storage_dtype).itemsize
    bytes_per_pair = 2 * W * C * itemsize        # input bytes per output row-pair
    target_tile_bytes = 4 * 1024 * 1024          # safe for v5e/v6e and v7x VMEM
    RP = N * Hp                                  # total output row-pairs
    th = _pick_row_pair_tile(RP, Wp, bytes_per_pair, target_tile_bytes)

    if th is not None:
        num_tiles = RP // th
        M_pad = M
    else:
        # Rare fallback (no suitable divisor): pad trailing rows.  Padded rows
        # yield garbage (BN shift != 0) but are strictly trailing and sliced off.
        q = 8 // math.gcd(Wp, 8)
        max_th = max(1, target_tile_bytes // bytes_per_pair)
        th = max(q, (min(max_th, RP) // q) * q)
        num_tiles = -(-RP // th)
        RP_pad = num_tiles * th
        x_rows = jnp.pad(x_rows, ((0, 2 * (RP_pad - RP)), (0, 0), (0, 0)))
        M_pad = num_tiles * th * Wp

    out = pl.pallas_call(
        _transition_kernel,
        out_shape=jax.ShapeDtypeStruct((M_pad, Cout), jnp.float32),
        grid_spec=pltpu.PrefetchScalarGridSpec(
            num_scalar_prefetch=0,
            grid=(num_tiles,),
            in_specs=[
                pl.BlockSpec((2 * th, Wp, 2 * C), lambda i: (i, 0, 0)),
                pl.BlockSpec((1, 1, 2 * C), lambda i: (0, 0, 0)),
                pl.BlockSpec((1, 1, 2 * C), lambda i: (0, 0, 0)),
                pl.BlockSpec((C, Cout), lambda i: (0, 0)),
            ],
            out_specs=pl.BlockSpec((th * Wp, Cout), lambda i: (i, 0)),
        ),
        compiler_params=pltpu.CompilerParams(
            dimension_semantics=("parallel",),
            vmem_limit_bytes=48 * 1024 * 1024,
            # let XLA fuse the transpose/convert producer into operand 0's read
            allow_input_fusion=[True, False, False, False]),
    )(x_rows, scale2, shift2, w)

    if M_pad != M:
        out = out[:M]
    out = out.reshape(N, Hp, Wp, Cout).transpose(0, 3, 1, 2)
    return out.astype(x_nchw.dtype)


def transition_reference(x, gamma, beta, conv_w, eps=1e-5):
    """Pure-JAX reference matching PyTorch training-mode forward."""
    mean = x.mean((0, 2, 3), keepdims=True)
    var = ((x - mean) ** 2).mean((0, 2, 3), keepdims=True)
    xn = (x - mean) / jnp.sqrt(var + eps)
    xn = xn * gamma[None, :, None, None] + beta[None, :, None, None]
    h = jnp.maximum(xn, 0.0)
    Cout = conv_w.shape[0]
    y = jnp.einsum('nchw,oc->nohw', h, conv_w.reshape(Cout, -1))
    N, Co, H, W = y.shape
    return y.reshape(N, Co, H // 2, 2, W // 2, 2).mean((3, 5))


if __name__ == "__main__":
    key = jax.random.PRNGKey(0)
    kx, kg, kb, kw = jax.random.split(key, 4)

    N, C, H, W = 2, 4, 16, 16   # nChannels = 4
    Cout = 2                    # nOutChannels = 2

    x = jax.random.normal(kx, (N, C, H, W), dtype=jnp.float32)
    gamma = 1.0 + 0.1 * jax.random.normal(kg, (C,), dtype=jnp.float32)
    beta = 0.1 * jax.random.normal(kb, (C,), dtype=jnp.float32)
    conv_w = jax.random.normal(kw, (Cout, C, 1, 1), dtype=jnp.float32) * (2.0 / C) ** 0.5

    ref = transition_reference(x, gamma, beta, conv_w)

    # Exact-math path (f32 storage): must match the PyTorch-style reference tightly.
    fwd_f32 = jax.jit(functools.partial(transition_forward, storage_dtype=jnp.float32))
    out_f32 = jax.block_until_ready(fwd_f32(x, gamma, beta, conv_w))
    assert out_f32.shape == (N, Cout, H // 2, W // 2), out_f32.shape
    np.testing.assert_allclose(np.asarray(out_f32), np.asarray(ref),
                               rtol=1e-5, atol=1e-5)

    # Production path (bf16 activation storage + bf16 MXU): halves HBM traffic.
    fwd_bf16 = jax.jit(functools.partial(transition_forward, storage_dtype=jnp.bfloat16))
    out_bf16 = jax.block_until_ready(fwd_bf16(x, gamma, beta, conv_w))
    np.testing.assert_allclose(np.asarray(out_bf16), np.asarray(ref),
                               rtol=5e-2, atol=5e-2)

    print("KERNEL_OK")
</pallas_src>

<mosaic_0001>
module attributes {stable_mosaic.version = 11 : i64} {
  func.func @_transition_kernel(%arg0: i32, %arg1: memref<16x8x8xf32, #tpu.memory_space<vmem>>, %arg2: memref<1x1x8xf32, #tpu.memory_space<vmem>>, %arg3: memref<1x1x8xf32, #tpu.memory_space<vmem>>, %arg4: memref<4x2xf32, #tpu.memory_space<vmem>>, %arg5: memref<64x2xf32, #tpu.memory_space<vmem>>) attributes {dimension_semantics = [#tpu.dimension_semantics<parallel>], iteration_bounds = array<i64: 2>, scalar_prefetch = 0 : i64, scratch_operands = 0 : i64, tpu.core_type = #tpu.core_type<tc>, window_params = [{transform_indices = @transform_0, window_bounds = array<i64: 16, 8, 8>}, {pipeline_mode = #tpu.pipeline_mode<synchronous>, transform_indices = @transform_1, window_bounds = array<i64: 1, 1, 8>}, {pipeline_mode = #tpu.pipeline_mode<synchronous>, transform_indices = @transform_2, window_bounds = array<i64: 1, 1, 8>}, {pipeline_mode = #tpu.pipeline_mode<synchronous>, transform_indices = @transform_3, window_bounds = array<i64: 4, 2>}, {transform_indices = @transform_4, window_bounds = array<i64: 64, 2>}]} {
    %c0 = arith.constant 0 : index
    %c0_0 = arith.constant 0 : index
    %c0_1 = arith.constant 0 : index
    %0 = vector.load %arg1[%c0, %c0_0, %c0_1] : memref<16x8x8xf32, #tpu.memory_space<vmem>>, vector<16x8x8xf32>
    %c0_2 = arith.constant 0 : index
    %c0_3 = arith.constant 0 : index
    %c0_4 = arith.constant 0 : index
    %1 = vector.load %arg2[%c0_2, %c0_3, %c0_4] : memref<1x1x8xf32, #tpu.memory_space<vmem>>, vector<1x1x8xf32>
    %2 = vector.broadcast %1 : vector<1x1x8xf32> to vector<16x8x8xf32>
    %3 = arith.mulf %0, %2 : vector<16x8x8xf32>
    %c0_5 = arith.constant 0 : index
    %c0_6 = arith.constant 0 : index
    %c0_7 = arith.constant 0 : index
    %4 = vector.load %arg3[%c0_5, %c0_6, %c0_7] : memref<1x1x8xf32, #tpu.memory_space<vmem>>, vector<1x1x8xf32>
    %5 = vector.broadcast %4 : vector<1x1x8xf32> to vector<16x8x8xf32>
    %6 = arith.addf %3, %5 : vector<16x8x8xf32>
    %cst = arith.constant 0.000000e+00 : f32
    %7 = vector.broadcast %cst : f32 to vector<16x8x8xf32>
    %8 = arith.maximumf %6, %7 : vector<16x8x8xf32>
    %9 = vector.extract_strided_slice %8 {offsets = [0, 0, 0], sizes = [16, 8, 4], strides = [1, 1, 1]} : vector<16x8x8xf32> to vector<16x8x4xf32>
    %10 = vector.extract_strided_slice %8 {offsets = [0, 0, 4], sizes = [16, 8, 4], strides = [1, 1, 1]} : vector<16x8x8xf32> to vector<16x8x4xf32>
    %11 = arith.addf %9, %10 : vector<16x8x4xf32>
    %12 = vector.shape_cast %11 : vector<16x8x4xf32> to vector<8x2x8x4xf32>
    %13 = vector.extract_strided_slice %12 {offsets = [0, 0, 0, 0], sizes = [8, 1, 8, 4], strides = [1, 1, 1, 1]} : vector<8x2x8x4xf32> to vector<8x1x8x4xf32>
    %14 = vector.shape_cast %13 : vector<8x1x8x4xf32> to vector<8x8x4xf32>
    %15 = vector.extract_strided_slice %12 {offsets = [0, 1, 0, 0], sizes = [8, 1, 8, 4], strides = [1, 1, 1, 1]} : vector<8x2x8x4xf32> to vector<8x1x8x4xf32>
    %16 = vector.shape_cast %15 : vector<8x1x8x4xf32> to vector<8x8x4xf32>
    %17 = arith.addf %14, %16 : vector<8x8x4xf32>
    %18 = vector.shape_cast %17 : vector<8x8x4xf32> to vector<64x4xf32>
    %c0_8 = arith.constant 0 : index
    %c0_9 = arith.constant 0 : index
    %19 = vector.load %arg4[%c0_8, %c0_9] : memref<4x2xf32, #tpu.memory_space<vmem>>, vector<4x2xf32>
    %cst_10 = arith.constant dense<0.000000e+00> : vector<64x2xf32>
    %20 = tpu.matmul %18, %19, %cst_10 {dimension_numbers = #tpu.dot_dimension_numbers<[1], [0], [0], [1], [0, 0, 1, 1], [], []>} : vector<64x4xf32>, vector<4x2xf32>, vector<64x2xf32> -> vector<64x2xf32>
    %c0_11 = arith.constant 0 : index
    %c0_12 = arith.constant 0 : index
    %21 = vector.load %arg5[%c0_11, %c0_12] : memref<64x2xf32, #tpu.memory_space<vmem>>, vector<64x2xf32>
    tpu.vector_store %arg5[%c0_11, %c0_12], %20 {strides = array<i32>} : memref<64x2xf32, #tpu.memory_space<vmem>>, vector<64x2xf32>,
    return
  }
  func.func @transform_0(%arg0: i32) -> (i32, i32, i32) {
    %c0_i32 = arith.constant 0 : i32
    %c0_i32_0 = arith.constant 0 : i32
    %c0_i32_1 = arith.constant 0 : i32
    return %arg0, %c0_i32, %c0_i32_0 : i32, i32, i32
  }
  func.func @transform_1(%arg0: i32) -> (i32, i32, i32) {
    %c0_i32 = arith.constant 0 : i32
    %c0_i32_0 = arith.constant 0 : i32
    %c0_i32_1 = arith.constant 0 : i32
    %c0_i32_2 = arith.constant 0 : i32
    return %c0_i32, %c0_i32_0, %c0_i32_1 : i32, i32, i32
  }
  func.func @transform_2(%arg0: i32) -> (i32, i32, i32) {
    %c0_i32 = arith.constant 0 : i32
    %c0_i32_0 = arith.constant 0 : i32
    %c0_i32_1 = arith.constant 0 : i32
    %c0_i32_2 = arith.constant 0 : i32
    return %c0_i32, %c0_i32_0, %c0_i32_1 : i32, i32, i32
  }
  func.func @transform_3(%arg0: i32) -> (i32, i32) {
    %c0_i32 = arith.constant 0 : i32
    %c0_i32_0 = arith.constant 0 : i32
    %c0_i32_1 = arith.constant 0 : i32
    return %c0_i32, %c0_i32_0 : i32, i32
  }
  func.func @transform_4(%arg0: i32) -> (i32, i32) {
    %c0_i32 = arith.constant 0 : i32
    %c0_i32_0 = arith.constant 0 : i32
    return %arg0, %c0_i32 : i32, i32
  }
}

</mosaic_0001>

<bundles_post_ra>
// kernel: transition_forward.1
= control target key start
LH: loop header
LB: loop body
LE: loop exit
PB: predicated region body
PF: predicated region fallthrough
CT: control target
= control target key end

     0   :  { %s657_s15 = smov 0   ;;  %s831_s0 = inlined_call_operand.vmem [shape: f32[32,8,8], index: 0, kind: input, shape index: {}]   ;;  %s832_s1 = inlined_call_operand.vmem [shape: f32[1,1,8], index: 1, kind: input, shape index: {}]   ;;  %s833_s2 = inlined_call_operand.vmem [shape: f32[1,1,8], index: 2, kind: input, shape index: {}]   ;;  %s834_s3 = inlined_call_operand.vmem [shape: f32[4,2], index: 3, kind: input, shape index: {}]   ;;  %s835_s4 = inlined_call_operand.vmem [shape: f32[128,2], index: 4, kind: output, shape index: {}]  }
   0x1 LB: > { %s567_s16 = sadd.s32 4294967295, %s629_s15   ;;  %p571_p0 = scmp.ge.s32.totalorder %s629_s15, 1  ;;  %s629_s15 = sphi %s657_s15, %s14_s15  }
   0x2   : > { %p163_p1 = scmp.lt.s32.totalorder %s629_s15, 3 }
   0x4   : > { %p164_p2 = pnand %p571_p0, %p163_p1 }
   0x5   : > { %s572_s17 = sshll.u32 (!%p164_p2), %s567_s16, 4  ;;  %v670_v0 = vld [vmem:[%s832_s1] ss:$0 sm:$0xff] (!%p164_p2)  ;;  %s631_s26 = smov (!%p164_p2), 124   ;;  %vm393_vm0 = vcmask (!%p164_p2), 1043456   ;;  %vm368_vm1 = vcmask (!%p164_p2), 31744  }
   0x6   : > { %167 = sbr.rel (%p164_p2) target bundleno = 385 (0x181), region = 36  ;;  %p190_p3 = scmp.lt.s32.totalorder (!%p164_p2), %s572_s17, 31  ;;  %v680_v1 = vld [vmem:[%s833_s2] ss:$0 sm:$0xff] (!%p164_p2)  ;;  %vm502_vm2 = vcmask (!%p164_p2), 15360  }
   0x7   : > { %v367_v37 = vld [vmem:[%s834_s3] sm:$0xf] (!%p164_p2)  ;;  %s574_s29 = sshll.u32 (!%p164_p2), %s567_s16, 3 }
   0x8   : > { %598 = vmatprep.subr.msk.mxu0 (!%p164_p2), %vm393_vm0, %v367_v37  ;;  %612 = vmatprep.subr.msk.mxu1 (!%p164_p2), %vm393_vm0, %v367_v37  ;;  %p196_p4 = scmp.lt.s32.totalorder (!%p164_p2), %s574_s29, 15 }
   0x9   : > { %599 = vmatpush3.msk.msra.mxu0 (!%p164_p2), %vm393_vm0, %v367_v37  ;;  %613 = vmatpush3.msk.msra.mxu1 (!%p164_p2), %vm393_vm0, %v367_v37 }
   0xd   : > { %s837_s17 = smov (!%p190_p3, %s572_s17), 31  ;;  %s839_s29 = smov (!%p196_p4, %s574_s29), 15 }
   0xe   : > { %s573_s18 = sshll.u32 %s837_s17, 3  ;;  %s575_s30 = sshll.u32 %s839_s29, 3 }
   0xf   : > { %s675_s23 = scalar_lea.vmem %s831_s0, %s573_s18  ;;  %s199_s7 = scalar_lea.vmem %s835_s4, %s575_s30 }
  0x10   : > { %v209_v2 = vld [vmem:[%s675_s23 + $0x40] sm:$0xff]  ;;  %v210_v4 = vld [vmem:[%s675_s23 + $0x48] sm:$0xff]  ;;  %v204_v9 = vld [vmem:[%s675_s23 + $0x18] sm:$0xff] }
  0x11   : > { %v201_v3 = vld [vmem:[%s675_s23] sm:$0xff]  ;;  %v232_v5 = vmul.f32 %v670_v0, %v209_v2  ;;  %v233_v7 = vmul.f32 %v670_v0, %v210_v4  ;;  %v202_v8 = vld [vmem:[%s675_s23 + $0x8] sm:$0xff]  ;;  %v203_v10 = vld [vmem:[%s675_s23 + $0x10] sm:$0xff]  ;;  %v227_v12 = vmul.f32 %v670_v0, %v204_v9 }
  0x12   : > { %v224_v6 = vmul.f32 %v670_v0, %v201_v3  ;;  %v225_v11 = vmul.f32 %v670_v0, %v202_v8  ;;  %v226_v16 = vmul.f32 %v670_v0, %v203_v10  ;;  %v212_v17 = vld [vmem:[%s675_s23 + $0x58] sm:$0xff]  ;;  %v211_v19 = vld [vmem:[%s675_s23 + $0x50] sm:$0xff]  ;;  %v206_v28 = vld [vmem:[%s675_s23 + $0x28] sm:$0xff] }
  0x13   : > { %v694_v13 = vadd.f32 %v680_v1, %v232_v5  ;;  %v700_v15 = vadd.f32 %v680_v1, %v233_v7  ;;  %v711_v22 = vadd.f32 %v680_v1, %v227_v12  ;;  %v235_v23 = vmul.f32 %v670_v0, %v212_v17  ;;  %v205_v29 = vld [vmem:[%s675_s23 + $0x20] sm:$0xff]  ;;  %v214_v36 = vld [vmem:[%s675_s23 + $0x68] sm:$0xff]  ;;  %v208_v45 = vld [vmem:[%s675_s23 + $0x38] sm:$0xff] }
  0x14   : > { %v697_v14 = vadd.f32 %v680_v1, %v224_v6  ;;  %v705_v18 = vadd.f32 %v680_v1, %v225_v11  ;;  %v723_v26 = vadd.f32 %v680_v1, %v226_v16  ;;  %v234_v27 = vmul.f32 %v670_v0, %v211_v19  ;;  %v213_v38 = vld [vmem:[%s675_s23 + $0x60] sm:$0xff]  ;;  %v207_v46 = vld [vmem:[%s675_s23 + $0x30] sm:$0xff]  ;;  %v216_v53 = vld [vmem:[%s675_s23 + $0x78] sm:$0xff] }
  0x15   : > { %v271_v20 = vmax.f32 %v694_v13, 0.0  ;;  %v272_v24 = vmax.f32 %v700_v15, 0.0  ;;  %v266_v30 = vmax.f32 %v711_v22, 0.0  ;;  %v730_v31 = vadd.f32 %v680_v1, %v235_v23  ;;  %v215_v54 = vld [vmem:[%s675_s23 + $0x70] sm:$0xff] }
  0x16   : > { %v263_v21 = vmax.f32 %v697_v14, 0.0  ;;  %v264_v25 = vmax.f32 %v705_v18, 0.0  ;;  %v265_v32 = vmax.f32 %v723_v26, 0.0  ;;  %v740_v33 = vadd.f32 %v680_v1, %v234_v27 }
  0x17   : > { %311 = vrot.lane.b32.xlu1 %v271_v20, %s631_s26  ;;  %v229_v34 = vmul.f32 %v670_v0, %v206_v28  ;;  %v228_v35 = vmul.f32 %v670_v0, %v205_v29  ;;  %v274_v39 = vmax.f32 %v730_v31, 0.0  ;;  %v237_v40 = vmul.f32 %v670_v0, %v214_v36 }
  0x18   : > { %295 = vrot.lane.b32.xlu0 %v263_v21, %s631_s26  ;;  %v273_v41 = vmax.f32 %v740_v33, 0.0  ;;  %v236_v44 = vmul.f32 %v670_v0, %v213_v38  ;;  %v231_v47 = vmul.f32 %v670_v0, %v208_v45  ;;  %v230_v48 = vmul.f32 %v670_v0, %v207_v46 }
  0x19   : > { %v759_v42 = vadd.f32 %v680_v1, %v229_v34  ;;  %v762_v43 = vadd.f32 %v680_v1, %v228_v35  ;;  %v260_v51 = vadd.f32 %v680_v1, %v237_v40  ;;  %v239_v56 = vmul.f32 %v670_v0, %v216_v53 }
  0x1a   : > { %v259_v52 = vadd.f32 %v680_v1, %v236_v44  ;;  %v254_v55 = vadd.f32 %v680_v1, %v231_v47  ;;  %v253_v59 = vadd.f32 %v680_v1, %v230_v48  ;;  %v238_v60 = vmul.f32 %v670_v0, %v215_v54 }
  0x1b   : > { %313 = vrot.lane.b32.xlu1 %v272_v24, %s631_s26  ;;  %v268_v49 = vmax.f32 %v759_v42, 0.0  ;;  %v267_v50 = vmax.f32 %v762_v43, 0.0  ;;  %v276_v57 = vmax.f32 %v260_v51, 0.0  ;;  %v262_v63 = vadd.f32 %v680_v1, %v239_v56 }
  0x1c   : > { %297 = vrot.lane.b32.xlu0 %v264_v25, %s631_s26  ;;  %v275_v58 = vmax.f32 %v259_v52, 0.0  ;;  %v270_v61 = vmax.f32 %v254_v55, 0.0  ;;  %v269_v62 = vmax.f32 %v253_v59, 0.0  ;;  %v261_v2 = vadd.f32 %v680_v1, %v238_v60 }
  0x1d   : > { %v278_v3 = vmax.f32 %v262_v63, 0.0 }
  0x1e   : > { %v277_v4 = vmax.f32 %v261_v2, 0.0 }
  0x1f   : > { %301 = vrot.lane.b32.xlu1 %v266_v30, %s631_s26 }
  0x20   : > { %299 = vrot.lane.b32.xlu0 %v265_v32, %s631_s26 }
  0x23   : > { %317 = vrot.lane.b32.xlu1 %v274_v39, %s631_s26 }
  0x24   : > { %315 = vrot.lane.b32.xlu0 %v273_v41, %s631_s26 }
  0x27   : > { %305 = vrot.lane.b32.xlu1 %v268_v49, %s631_s26 }
  0x28   : > { %303 = vrot.lane.b32.xlu0 %v267_v50, %s631_s26 }
  0x2b   : > { %321 = vrot.lane.b32.xlu1 %v276_v57, %s631_s26 }
  0x2c   : > { %319 = vrot.lane.b32.xlu0 %v275_v58, %s631_s26 }
  0x2f   : > { %309 = vrot.lane.b32.xlu1 %v270_v61, %s631_s26 }
  0x30   : > { %307 = vrot.lane.b32.xlu0 %v269_v62, %s631_s26 }
  0x33   : > { %325 = vrot.lane.b32.xlu1 %v278_v3, %s631_s26 }
  0x34   : > { %323 = vrot.lane.b32.xlu0 %v277_v4, %s631_s26 }
  0x89   : > { %v312_v0 = vpop.permute.xlu1 %311 }
  0x8a   : > { %v296_v5 = vpop.permute.xlu0 %295  ;;  %v351_v8 = vadd.f32 %v312_v0, %v271_v20 }
  0x8b   : > { %v343_v1 = vadd.f32 %v296_v5, %v263_v21 }
  0x8d   : > { %v314_v6 = vpop.permute.xlu1 %313 }
  0x8e   : > { %v298_v7 = vpop.permute.xlu0 %297  ;;  %v352_v9 = vadd.f32 %v314_v6, %v272_v24 }
  0x8f   : > { %v344_v10 = vadd.f32 %v298_v7, %v264_v25 }
  0x90   : > { %v363_v12 = vadd.f32 %v352_v9, %v351_v8 }
  0x91   : > { %v359_v11 = vadd.f32 %v344_v10, %v343_v1  ;;  %v302_v16 = vpop.permute.xlu1 %301 }
  0x92   : > { %v300_v17 = vpop.permute.xlu0 %299  ;;  %v346_v19 = vadd.f32 %v302_v16, %v266_v30  ;;  %606 = vmatprep.mubr.msk.f32.mxu1 %vm368_vm1, %v363_v12 }
  0x93   : > { %v345_v13 = vadd.f32 %v300_v17, %v265_v32  ;;  %600 = vmatprep.mubr.msk.f32.mxu0 %vm368_vm1, %v359_v11 }
  0x95   : > { %v360_v14 = vadd.f32 %v346_v19, %v345_v13  ;;  %v318_v15 = vpop.permute.xlu1 %317 }
  0x96   : > { %v316_v20 = vpop.permute.xlu0 %315  ;;  %v354_v18 = vadd.f32 %v318_v15, %v274_v39 }
  0x97   : > { %v353_v21 = vadd.f32 %v316_v20, %v273_v41  ;;  %601 = vmatmul.mubr.msk.f32.vlgmr.msra.gmra.mrb[0].mxu0 %vm368_vm1, %v360_v14 }
  0x99   : > { %v364_v23 = vadd.f32 %v354_v18, %v353_v21  ;;  %v306_v24 = vpop.permute.xlu1 %305 }
  0x9a   : > { %v304_v22 = vpop.permute.xlu0 %303  ;;  %v348_v25 = vadd.f32 %v306_v24, %v268_v49 }
  0x9b   : > { %v347_v27 = vadd.f32 %v304_v22, %v267_v50  ;;  %607 = vmatmul.mubr.msk.f32.vlgmr.msra.gmra.mrb[0].mxu1 %vm368_vm1, %v364_v23 }
  0x9d   : > { %v361_v26 = vadd.f32 %v348_v25, %v347_v27  ;;  %v322_v28 = vpop.permute.xlu1 %321 }
  0x9e   : > { %v320_v29 = vpop.permute.xlu0 %319  ;;  %v356_v30 = vadd.f32 %v322_v28, %v276_v57 }
  0x9f   : > { %v355_v32 = vadd.f32 %v320_v29, %v275_v58  ;;  %603 = vmatprep.mubr.msk.f32.mxu0 %vm368_vm1, %v361_v26 }
  0xa1   : > { %v365_v31 = vadd.f32 %v356_v30, %v355_v32  ;;  %v310_v33 = vpop.permute.xlu1 %309 }
  0xa2   : > { %v308_v34 = vpop.permute.xlu0 %307  ;;  %v350_v35 = vadd.f32 %v310_v33, %v270_v61 }
  0xa3   : > { %v349_v36 = vadd.f32 %v308_v34, %v269_v62  ;;  %609 = vmatprep.mubr.msk.f32.mxu1 %vm368_vm1, %v365_v31 }
  0xa5   : > { %v362_v37 = vadd.f32 %v350_v35, %v349_v36  ;;  %v326_v38 = vpop.permute.xlu1 %325 }
  0xa6   : > { %v324_v39 = vpop.permute.xlu0 %323  ;;  %v358_v40 = vadd.f32 %v326_v38, %v278_v3 }
  0xa7   : > { %v357_v41 = vadd.f32 %v324_v39, %v277_v4  ;;  %604 = vmatmul.mubr.msk.f32.gmra.mrb[2].mxu0 %vm368_vm1, %v362_v37 }
  0xa9   : > { %v366_v42 = vadd.f32 %v358_v40, %v357_v41 }
  0xab   : > { %610 = vmatmul.mubr.msk.f32.gmra.mrb[2].mxu1 %vm368_vm1, %v366_v42 }
 0x16a   : > { %v602_v43 = vpop.f32.mrb[0].mxu0 }
 0x16b   : > { %504 = vst.msk [vmem:[%s199_s7 + $0x8] sm:$0xff] %vm502_vm2, %v602_v43  ;;  %v463_v44 = vpop.f32.mrb[1].mxu0 }
 0x16c   : > { %503 = vst.msk [vmem:[%s199_s7] sm:$0xff] %vm502_vm2, %v463_v44 }
 0x16e   : > { %v608_v45 = vpop.f32.mrb[0].mxu1 }
 0x16f   : > { %508 = vst.msk [vmem:[%s199_s7 + $0x28] sm:$0xff] %vm502_vm2, %v608_v45  ;;  %v483_v46 = vpop.f32.mrb[1].mxu1 }
 0x170   : > { %507 = vst.msk [vmem:[%s199_s7 + $0x20] sm:$0xff] %vm502_vm2, %v483_v46 }
 0x17a   : > { %v605_v47 = vpop.f32.mrb[2].mxu0 }
 0x17b   : > { %506 = vst.msk [vmem:[%s199_s7 + $0x18] sm:$0xff] %vm502_vm2, %v605_v47  ;;  %v473_v48 = vpop.f32.mrb[3].mxu0 }
 0x17c   : > { %505 = vst.msk [vmem:[%s199_s7 + $0x10] sm:$0xff] %vm502_vm2, %v473_v48 }
 0x17e   : > { %v611_v49 = vpop.f32.mrb[2].mxu1 }
 0x17f   : > { %510 = vst.msk [vmem:[%s199_s7 + $0x38] sm:$0xff] %vm502_vm2, %v611_v49  ;;  %v493_v50 = vpop.f32.mrb[3].mxu1 }
 0x180   : > { %509 = vst.msk [vmem:[%s199_s7 + $0x30] sm:$0xff] %vm502_vm2, %v493_v50 }
 0x181 PF: > { %s14_s15 = sadd.s32 1, %s629_s15  }
 0x182   : > { %p11_p5 = scmp.ge.s32.totalorder %s14_s15, 4  }
 0x184   :  { %13 = sbr.rel (!%p11_p5) target bundleno = 1 (0x1), region = 66 }

</bundles_post_ra>
